<compile_context>
chip_gen: v5e
topology: v5e:2x2
jax: 0.10.0
libtpu: 0.0.40
codegen_flags: <defaults>
</compile_context>

<pallas_src>
import functools
import math

import jax
import jax.numpy as jnp
from jax import lax
from jax.experimental import pallas as pl
from jax.experimental.pallas import tpu as pltpu


def _layernorm_f32(x, scale, shift, eps):
    mean = jnp.mean(x, axis=-1, keepdims=True)
    var = jnp.mean(jnp.square(x - mean), axis=-1, keepdims=True)   # biased var
    return (x - mean) * lax.rsqrt(var + eps) * scale + shift


def _transformer_block_kernel(
    x_ref, ln1s_ref, ln1b_ref, wqkv_ref, bqkv_ref, wo_ref, bo_ref,
    ln2s_ref, ln2b_ref, w1_ref, b1_ref, w2_ref, b2_ref,
    o_ref, acc_ref, *, num_heads, head_dim, eps, act_dtype):
    f32 = jnp.float32
    bf16 = jnp.bfloat16
    T = x_ref.shape[1]

    x = x_ref[0].astype(f32)                                        # (T, D)

    # ---- LayerNorm 1 (f32), bf16 copy for the MXU ----
    xn_b = _layernorm_f32(x, ln1s_ref[...], ln1b_ref[...], eps).astype(bf16)

    # ---- in-kernel additive causal mask (finite sentinel; exp -> 0) ----
    row = lax.broadcasted_iota(jnp.int32, (T, T), 0)
    col = lax.broadcasted_iota(jnp.int32, (T, T), 1)
    mask = jnp.where(col > row, f32(-1e30), f32(0.0))

    # ---- causal attention: loop over heads, accumulate output projection ----
    acc_ref[...] = jnp.zeros_like(acc_ref)

    def head_body(h, carry):
        # (T, 3*hd) per-head fused QKV; W_q / b_q already scaled by 1/sqrt(hd).
        qkv_h = (jnp.dot(xn_b, wqkv_ref[h], preferred_element_type=f32)
                 + bqkv_ref[h])
        q = qkv_h[:, :head_dim].astype(bf16)
        k = qkv_h[:, head_dim:2 * head_dim].astype(bf16)
        v = qkv_h[:, 2 * head_dim:].astype(bf16)

        s = lax.dot_general(q, k, (((1,), (1,)), ((), ())),
                            preferred_element_type=f32) + mask      # (T, T) f32
        m = jnp.max(s, axis=-1, keepdims=True)
        p = jnp.exp(s - m)
        denom = jnp.sum(p, axis=-1, keepdims=True)
        attn = (p * pl.reciprocal(denom, approx=True)).astype(bf16)

        ctx_h = jnp.dot(attn, v, preferred_element_type=f32)        # (T, hd)
        acc_ref[...] += jnp.dot(ctx_h.astype(bf16), wo_ref[h],
                                preferred_element_type=f32)         # (T, D)
        return carry

    lax.fori_loop(0, num_heads, head_body, 0)

    # ---- output-projection bias + residual (f32) ----
    x1 = x + acc_ref[...] + bo_ref[...]

    # ---- LayerNorm 2 + GELU MLP + residual ----
    xn2 = _layernorm_f32(x1, ln2s_ref[...], ln2b_ref[...], eps)
    h1 = jnp.dot(xn2.astype(bf16), w1_ref[...],
                 preferred_element_type=f32) + b1_ref[...]          # (T, 4D) f32
    hg = h1.astype(act_dtype)
    c = act_dtype(math.sqrt(2.0 / math.pi))
    g = 0.5 * hg * (1.0 + jnp.tanh(c * (hg + act_dtype(0.044715) * hg * hg * hg)))
    ff = jnp.dot(g.astype(bf16), w2_ref[...],
                 preferred_element_type=f32) + b2_ref[...]          # (T, D) f32

    o_ref[0] = (x1 + ff).astype(o_ref.dtype)


def fuse_params(params, *, num_heads, matmul_dtype=jnp.bfloat16):
    """One-time parameter fusion / head-major layout / bf16 cast.

    Call once at init (or under jit) so the per-forward path never re-pays the
    concat / cast HBM traffic.
    """
    D = params["wq"].shape[0]
    assert D % num_heads == 0
    hd = D // num_heads
    f32 = jnp.float32
    inv = 1.0 / math.sqrt(hd)
    zeros_d = jnp.zeros((D,), f32)

    def out_heads(w):       # (D_in, D_out) -> (H, D_in, hd), head-major
        return w.astype(f32).reshape(D, num_heads, hd).transpose(1, 0, 2)

    def out_heads_b(b):     # (D_out,) -> (H, 1, hd)
        return b.astype(f32).reshape(num_heads, 1, hd)

    w_qkv = jnp.concatenate(
        [out_heads(params["wq"]) * inv, out_heads(params["wk"]),
         out_heads(params["wv"])], axis=-1).astype(matmul_dtype)     # (H, D, 3*hd)
    b_qkv = jnp.concatenate(
        [out_heads_b(params.get("bq", zeros_d)) * inv,
         out_heads_b(params.get("bk", zeros_d)),
         out_heads_b(params.get("bv", zeros_d))], axis=-1)           # (H, 1, 3*hd)

    return dict(
        ln1s=params["ln1_scale"].astype(f32).reshape(1, D),
        ln1b=params["ln1_shift"].astype(f32).reshape(1, D),
        w_qkv=w_qkv,
        b_qkv=b_qkv,
        wo=params["wo"].astype(matmul_dtype).reshape(num_heads, hd, D),  # (H, hd, D)
        bo=params["bo"].astype(f32).reshape(1, D),
        ln2s=params["ln2_scale"].astype(f32).reshape(1, D),
        ln2b=params["ln2_shift"].astype(f32).reshape(1, D),
        w1=params["w1"].astype(matmul_dtype),                           # (D, 4D)
        b1=params["b1"].astype(f32).reshape(1, -1),
        w2=params["w2"].astype(matmul_dtype),                           # (4D, D)
        b2=params["b2"].astype(f32).reshape(1, D),
    )


def _const_spec(shape, index_map):
    # Resident operand (constant index_map): single-buffer it to halve its VMEM
    # footprint.  Fall back gracefully if this Pallas build lacks pipeline_mode.
    try:
        return pl.BlockSpec(shape, index_map, pipeline_mode=pl.Buffered(1))
    except (AttributeError, TypeError):
        return pl.BlockSpec(shape, index_map)


def transformer_block_fused(x, fp, *, num_heads, eps=1e-5,
                            mlp_activation_dtype=jnp.bfloat16):
    """x: (B, T, D); fp: output of fuse_params (weights already fused/cast)."""
    B, T, D = x.shape
    assert D % num_heads == 0
    hd = D // num_heads
    H = num_heads

    c2 = lambda b: (0, 0)
    c3 = lambda b: (0, 0, 0)

    # Explicit VMEM budget: resident bf16 weights (single-buffered), f32
    # activations, double-buffered x/out blocks; clamped to [32 MiB, 64 MiB].
    weight_bytes = 2 * (3 * D * D + D * D + 4 * D * D + 4 * D * D)
    act_bytes = 4 * (T * 3 * hd + 2 * T * T + 3 * T * D + 2 * T * 4 * D)
    io_bytes = 4 * 2 * 2 * T * D
    vmem_limit = int(min(64 * 1024 * 1024,
                         max(32 * 1024 * 1024,
                             2 * (weight_bytes + act_bytes + io_bytes))))

    kernel = functools.partial(
        _transformer_block_kernel, num_heads=H, head_dim=hd, eps=eps,
        act_dtype=mlp_activation_dtype)

    return pl.pallas_call(
        kernel,
        out_shape=jax.ShapeDtypeStruct((B, T, D), x.dtype),
        grid_spec=pltpu.PrefetchScalarGridSpec(
            num_scalar_prefetch=0,
            grid=(B,),
            in_specs=[
                pl.BlockSpec((1, T, D), lambda b: (b, 0, 0)),   # x (pipelined)
                _const_spec((1, D), c2),                        # ln1 scale
                _const_spec((1, D), c2),                        # ln1 shift
                _const_spec((H, D, 3 * hd), c3),                # head-major W_qkv
                _const_spec((H, 1, 3 * hd), c3),                # head-major b_qkv
                _const_spec((H, hd, D), c3),                    # head-major W_out
                _const_spec((1, D), c2),                        # b_out
                _const_spec((1, D), c2),                        # ln2 scale
                _const_spec((1, D), c2),                        # ln2 shift
                _const_spec((D, 4 * D), c2),                    # W1
                _const_spec((1, 4 * D), c2),                    # b1
                _const_spec((4 * D, D), c2),                    # W2
                _const_spec((1, D), c2),                        # b2
            ],
            out_specs=pl.BlockSpec((1, T, D), lambda b: (b, 0, 0)),
            scratch_shapes=[pltpu.VMEM((T, D), jnp.float32)],   # attn-out acc
        ),
        compiler_params=pltpu.CompilerParams(
            dimension_semantics=("parallel",),
            vmem_limit_bytes=vmem_limit,
        ),
    )(x, fp["ln1s"], fp["ln1b"], fp["w_qkv"], fp["b_qkv"], fp["wo"], fp["bo"],
      fp["ln2s"], fp["ln2b"], fp["w1"], fp["b1"], fp["w2"], fp["b2"])


def transformer_block(x, params, *, num_heads, eps=1e-5):
    """Convenience wrapper (re-fuses params each call; prefer fusing once)."""
    return transformer_block_fused(x, fuse_params(params, num_heads=num_heads),
                                   num_heads=num_heads, eps=eps)


def _reference(x, p, *, num_heads, eps=1e-5):
    """Pure-JAX f32 reference reproducing the PyTorch TransformerBlock (eval)."""
    B, T, D = x.shape
    hd = D // num_heads

    def ln(v, s, b):
        m = v.mean(-1, keepdims=True)
        var = ((v - m) ** 2).mean(-1, keepdims=True)
        return s * (v - m) / jnp.sqrt(var + eps) + b

    xn = ln(x, p["ln1_scale"], p["ln1_shift"])
    q = xn @ p["wq"]
    k = xn @ p["wk"]
    v = xn @ p["wv"]
    split = lambda t: t.reshape(B, T, num_heads, hd).transpose(0, 2, 1, 3)
    q, k, v = split(q), split(k), split(v)
    s = jnp.einsum("bhqd,bhkd->bhqk", q, k) / math.sqrt(hd)
    causal = jnp.triu(jnp.ones((T, T), dtype=bool), k=1)
    s = jnp.where(causal, -jnp.inf, s)
    a = jax.nn.softmax(s, axis=-1)
    ctx = jnp.einsum("bhqk,bhkd->bhqd", a, v).transpose(0, 2, 1, 3).reshape(B, T, D)
    attn_out = ctx @ p["wo"] + p["bo"]
    x1 = x + attn_out
    xn2 = ln(x1, p["ln2_scale"], p["ln2_shift"])
    h1 = xn2 @ p["w1"] + p["b1"]
    c = math.sqrt(2.0 / math.pi)
    g = 0.5 * h1 * (1.0 + jnp.tanh(c * (h1 + 0.044715 * h1 ** 3)))
    ff = g @ p["w2"] + p["b2"]
    return x1 + ff


if __name__ == "__main__":
    # cfg: emb_dim=32, context_length=8, n_heads=4, drop_rate irrelevant (eval),
    # qkv_bias=False.
    B, T, D = 2, 8, 32
    num_heads = 4

    key = jax.random.PRNGKey(0)
    keys = jax.random.split(key, 16)
    f32 = jnp.float32

    x = jax.random.normal(keys[0], (B, T, D), dtype=f32)
    params = {
        "ln1_scale": 1.0 + 0.1 * jax.random.normal(keys[1], (D,), dtype=f32),
        "ln1_shift": 0.1 * jax.random.normal(keys[2], (D,), dtype=f32),
        "wq": 0.1 * jax.random.normal(keys[3], (D, D), dtype=f32),
        "wk": 0.1 * jax.random.normal(keys[4], (D, D), dtype=f32),
        "wv": 0.1 * jax.random.normal(keys[5], (D, D), dtype=f32),
        "wo": 0.1 * jax.random.normal(keys[6], (D, D), dtype=f32),
        "bo": 0.1 * jax.random.normal(keys[7], (D,), dtype=f32),
        "ln2_scale": 1.0 + 0.1 * jax.random.normal(keys[8], (D,), dtype=f32),
        "ln2_shift": 0.1 * jax.random.normal(keys[9], (D,), dtype=f32),
        "w1": 0.1 * jax.random.normal(keys[10], (D, 4 * D), dtype=f32),
        "b1": 0.1 * jax.random.normal(keys[11], (4 * D,), dtype=f32),
        "w2": 0.1 * jax.random.normal(keys[12], (4 * D, D), dtype=f32),
        "b2": 0.1 * jax.random.normal(keys[13], (D,), dtype=f32),
    }

    # Parameter fusion / layout / bf16 cast happens ONCE, outside the fwd path.
    fused = fuse_params(params, num_heads=num_heads)
    fwd = jax.jit(functools.partial(transformer_block_fused, num_heads=num_heads))

    out = jax.block_until_ready(fwd(x, fused))

    ref = _reference(x, params, num_heads=num_heads)
    assert out.shape == (B, T, D)
    # bf16 matmul operands + bf16 GELU (f32 accumulation) -> modest tolerance.
    assert jnp.allclose(out, ref, atol=5e-2, rtol=5e-2), "mismatch vs reference"

    print("KERNEL_OK")
</pallas_src>

<mosaic_0001>
module attributes {stable_mosaic.version = 11 : i64} {
  func.func @_transformer_block_kernel(%arg0: i32, %arg1: memref<1x8x32xf32, #tpu.memory_space<vmem>>, %arg2: memref<1x32xf32, #tpu.memory_space<vmem>>, %arg3: memref<1x32xf32, #tpu.memory_space<vmem>>, %arg4: memref<4x32x24xbf16, #tpu.memory_space<vmem>>, %arg5: memref<4x1x24xf32, #tpu.memory_space<vmem>>, %arg6: memref<4x8x32xbf16, #tpu.memory_space<vmem>>, %arg7: memref<1x32xf32, #tpu.memory_space<vmem>>, %arg8: memref<1x32xf32, #tpu.memory_space<vmem>>, %arg9: memref<1x32xf32, #tpu.memory_space<vmem>>, %arg10: memref<32x128xbf16, #tpu.memory_space<vmem>>, %arg11: memref<1x128xf32, #tpu.memory_space<vmem>>, %arg12: memref<128x32xbf16, #tpu.memory_space<vmem>>, %arg13: memref<1x32xf32, #tpu.memory_space<vmem>>, %arg14: memref<1x8x32xf32, #tpu.memory_space<vmem>>, %arg15: memref<8x32xf32, #tpu.memory_space<vmem>>) attributes {dimension_semantics = [#tpu.dimension_semantics<parallel>], iteration_bounds = array<i64: 2>, scalar_prefetch = 0 : i64, scratch_operands = 1 : i64, tpu.core_type = #tpu.core_type<tc>, window_params = [{transform_indices = @transform_0, window_bounds = array<i64: 1, 8, 32>}, {pipeline_mode = #tpu.pipeline_mode<synchronous>, transform_indices = @transform_1, window_bounds = array<i64: 1, 32>}, {pipeline_mode = #tpu.pipeline_mode<synchronous>, transform_indices = @transform_2, window_bounds = array<i64: 1, 32>}, {pipeline_mode = #tpu.pipeline_mode<synchronous>, transform_indices = @transform_3, window_bounds = array<i64: 4, 32, 24>}, {pipeline_mode = #tpu.pipeline_mode<synchronous>, transform_indices = @transform_4, window_bounds = array<i64: 4, 1, 24>}, {pipeline_mode = #tpu.pipeline_mode<synchronous>, transform_indices = @transform_5, window_bounds = array<i64: 4, 8, 32>}, {pipeline_mode = #tpu.pipeline_mode<synchronous>, transform_indices = @transform_6, window_bounds = array<i64: 1, 32>}, {pipeline_mode = #tpu.pipeline_mode<synchronous>, transform_indices = @transform_7, window_bounds = array<i64: 1, 32>}, {pipeline_mode = #tpu.pipeline_mode<synchronous>, transform_indices = @transform_8, window_bounds = array<i64: 1, 32>}, {pipeline_mode = #tpu.pipeline_mode<synchronous>, transform_indices = @transform_9, window_bounds = array<i64: 32, 128>}, {pipeline_mode = #tpu.pipeline_mode<synchronous>, transform_indices = @transform_10, window_bounds = array<i64: 1, 128>}, {pipeline_mode = #tpu.pipeline_mode<synchronous>, transform_indices = @transform_11, window_bounds = array<i64: 128, 32>}, {pipeline_mode = #tpu.pipeline_mode<synchronous>, transform_indices = @transform_12, window_bounds = array<i64: 1, 32>}, {transform_indices = @transform_13, window_bounds = array<i64: 1, 8, 32>}]} {
    %c0 = arith.constant 0 : index
    %c0_0 = arith.constant 0 : index
    %c0_1 = arith.constant 0 : index
    %0 = vector.load %arg1[%c0, %c0_0, %c0_1] : memref<1x8x32xf32, #tpu.memory_space<vmem>>, vector<1x8x32xf32>
    %1 = vector.shape_cast %0 : vector<1x8x32xf32> to vector<8x32xf32>
    %c0_2 = arith.constant 0 : index
    %c0_3 = arith.constant 0 : index
    %2 = vector.load %arg2[%c0_2, %c0_3] : memref<1x32xf32, #tpu.memory_space<vmem>>, vector<1x32xf32>
    %c0_4 = arith.constant 0 : index
    %c0_5 = arith.constant 0 : index
    %3 = vector.load %arg3[%c0_4, %c0_5] : memref<1x32xf32, #tpu.memory_space<vmem>>, vector<1x32xf32>
    %cst = arith.constant dense<0.000000e+00> : vector<8xf32>
    %4 = vector.multi_reduction <add>, %1, %cst [1] : vector<8x32xf32> to vector<8xf32>
    %5 = vector.shape_cast %4 : vector<8xf32> to vector<8x1xf32>
    %cst_6 = arith.constant 3.200000e+01 : f32
    %6 = vector.broadcast %cst_6 : f32 to vector<8x1xf32>
    %7 = arith.divf %5, %6 : vector<8x1xf32>
    %8 = vector.broadcast %7 : vector<8x1xf32> to vector<8x32xf32>
    %9 = arith.subf %1, %8 : vector<8x32xf32>
    %10 = arith.mulf %9, %9 : vector<8x32xf32>
    %cst_7 = arith.constant dense<0.000000e+00> : vector<8xf32>
    %11 = vector.multi_reduction <add>, %10, %cst_7 [1] : vector<8x32xf32> to vector<8xf32>
    %12 = vector.shape_cast %11 : vector<8xf32> to vector<8x1xf32>
    %cst_8 = arith.constant 3.200000e+01 : f32
    %13 = vector.broadcast %cst_8 : f32 to vector<8x1xf32>
    %14 = arith.divf %12, %13 : vector<8x1xf32>
    %15 = vector.broadcast %7 : vector<8x1xf32> to vector<8x32xf32>
    %16 = arith.subf %1, %15 : vector<8x32xf32>
    %cst_9 = arith.constant 9.99999974E-6 : f32
    %17 = vector.broadcast %cst_9 : f32 to vector<8x1xf32>
    %18 = arith.addf %14, %17 : vector<8x1xf32>
    %19 = math.rsqrt %18 : vector<8x1xf32>
    %20 = vector.broadcast %19 : vector<8x1xf32> to vector<8x32xf32>
    %21 = arith.mulf %16, %20 : vector<8x32xf32>
    %22 = vector.broadcast %2 : vector<1x32xf32> to vector<8x32xf32>
    %23 = arith.mulf %21, %22 : vector<8x32xf32>
    %24 = vector.broadcast %3 : vector<1x32xf32> to vector<8x32xf32>
    %25 = arith.addf %23, %24 : vector<8x32xf32>
    %26 = arith.truncf %25 : vector<8x32xf32> to vector<8x32xbf16>
    %27 = tpu.iota {dimensions = array<i32: 0>} : vector<8x8xi32>
    %28 = tpu.iota {dimensions = array<i32: 1>} : vector<8x8xi32>
    %29 = arith.cmpi sgt, %28, %27 : vector<8x8xi32>
    %cst_10 = arith.constant -1.000000e+30 : f32
    %cst_11 = arith.constant 0.000000e+00 : f32
    %30 = vector.broadcast %cst_10 : f32 to vector<8x8xf32>
    %31 = vector.broadcast %cst_11 : f32 to vector<8x8xf32>
    %32 = arith.select %29, %30, %31 : vector<8x8xi1>, vector<8x8xf32>
    %cst_12 = arith.constant 0.000000e+00 : f32
    %33 = vector.broadcast %cst_12 : f32 to vector<8x32xf32>
    %c0_13 = arith.constant 0 : index
    %c0_14 = arith.constant 0 : index
    %34 = vector.load %arg15[%c0_13, %c0_14] : memref<8x32xf32, #tpu.memory_space<vmem>>, vector<8x32xf32>
    tpu.vector_store %arg15[%c0_13, %c0_14], %33 {strides = array<i32>} : memref<8x32xf32, #tpu.memory_space<vmem>>, vector<8x32xf32>,
    %c0_i32 = arith.constant 0 : i32
    %c4_i32 = arith.constant 4 : i32
    %35 = arith.addi %c0_i32, %c4_i32 : i32
    %c1_i32 = arith.constant 1 : i32
    scf.for %arg16 = %c0_i32 to %35 step %c1_i32  : i32 {
      %94 = arith.index_cast %arg16 : i32 to index
      %c0_46 = arith.constant 0 : index
      %c0_47 = arith.constant 0 : index
      %95 = vector.load %arg4[%94, %c0_46, %c0_47] : memref<4x32x24xbf16, #tpu.memory_space<vmem>>, vector<1x32x24xbf16>
      %96 = vector.shape_cast %95 : vector<1x32x24xbf16> to vector<32x24xbf16>
      %cst_48 = arith.constant dense<0.000000e+00> : vector<8x24xf32>
      %97 = tpu.matmul %26, %96, %cst_48 {dimension_numbers = #tpu.dot_dimension_numbers<[1], [0], [0], [1], [0, 0, 1, 1], [], []>} : vector<8x32xbf16>, vector<32x24xbf16>, vector<8x24xf32> -> vector<8x24xf32>
      %98 = arith.index_cast %arg16 : i32 to index
      %c0_49 = arith.constant 0 : index
      %c0_50 = arith.constant 0 : index
      %99 = vector.load %arg5[%98, %c0_49, %c0_50] : memref<4x1x24xf32, #tpu.memory_space<vmem>>, vector<1x1x24xf32>
      %100 = vector.shape_cast %99 : vector<1x1x24xf32> to vector<1x24xf32>
      %101 = vector.broadcast %100 : vector<1x24xf32> to vector<8x24xf32>
      %102 = arith.addf %97, %101 : vector<8x24xf32>
      %103 = vector.extract_strided_slice %102 {offsets = [0, 0], sizes = [8, 8], strides = [1, 1]} : vector<8x24xf32> to vector<8x8xf32>
      %104 = arith.truncf %103 : vector<8x8xf32> to vector<8x8xbf16>
      %105 = vector.extract_strided_slice %102 {offsets = [0, 8], sizes = [8, 8], strides = [1, 1]} : vector<8x24xf32> to vector<8x8xf32>
      %106 = arith.truncf %105 : vector<8x8xf32> to vector<8x8xbf16>
      %107 = vector.extract_strided_slice %102 {offsets = [0, 16], sizes = [8, 8], strides = [1, 1]} : vector<8x24xf32> to vector<8x8xf32>
      %108 = arith.truncf %107 : vector<8x8xf32> to vector<8x8xbf16>
      %cst_51 = arith.constant dense<0.000000e+00> : vector<8x8xf32>
      %109 = tpu.matmul %104, %106, %cst_51 {dimension_numbers = #tpu.dot_dimension_numbers<[1], [1], [0], [0], [0, 0, 1, 0], [], []>} : vector<8x8xbf16>, vector<8x8xbf16>, vector<8x8xf32> -> vector<8x8xf32>
      %110 = arith.addf %109, %32 : vector<8x8xf32>
      %cst_52 = arith.constant dense<0xFF800000> : vector<8xf32>
      %111 = vector.multi_reduction <maximumf>, %110, %cst_52 [1] : vector<8x8xf32> to vector<8xf32>
      %112 = vector.shape_cast %111 : vector<8xf32> to vector<8x1xf32>
      %113 = vector.broadcast %112 : vector<8x1xf32> to vector<8x8xf32>
      %114 = arith.subf %110, %113 : vector<8x8xf32>
      %115 = math.exp %114 : vector<8x8xf32>
      %cst_53 = arith.constant dense<0.000000e+00> : vector<8xf32>
      %116 = vector.multi_reduction <add>, %115, %cst_53 [1] : vector<8x8xf32> to vector<8xf32>
      %117 = vector.shape_cast %116 : vector<8xf32> to vector<8x1xf32>
      %118 = tpu.reciprocal %117 {approx = true} : vector<8x1xf32> -> vector<8x1xf32>
      %119 = vector.broadcast %118 : vector<8x1xf32> to vector<8x8xf32>
      %120 = arith.mulf %115, %119 : vector<8x8xf32>
      %121 = arith.truncf %120 : vector<8x8xf32> to vector<8x8xbf16>
      %cst_54 = arith.constant dense<0.000000e+00> : vector<8x8xf32>
      %122 = tpu.matmul %121, %108, %cst_54 {dimension_numbers = #tpu.dot_dimension_numbers<[1], [0], [0], [1], [0, 0, 1, 1], [], []>} : vector<8x8xbf16>, vector<8x8xbf16>, vector<8x8xf32> -> vector<8x8xf32>
      %c0_55 = arith.constant 0 : index
      %c0_56 = arith.constant 0 : index
      %123 = vector.load %arg15[%c0_55, %c0_56] : memref<8x32xf32, #tpu.memory_space<vmem>>, vector<8x32xf32>
      %124 = arith.truncf %122 : vector<8x8xf32> to vector<8x8xbf16>
      %125 = arith.index_cast %arg16 : i32 to index
      %c0_57 = arith.constant 0 : index
      %c0_58 = arith.constant 0 : index
      %126 = vector.load %arg6[%125, %c0_57, %c0_58] : memref<4x8x32xbf16, #tpu.memory_space<vmem>>, vector<1x8x32xbf16>
      %127 = vector.shape_cast %126 : vector<1x8x32xbf16> to vector<8x32xbf16>
      %cst_59 = arith.constant dense<0.000000e+00> : vector<8x32xf32>
      %128 = tpu.matmul %124, %127, %cst_59 {dimension_numbers = #tpu.dot_dimension_numbers<[1], [0], [0], [1], [0, 0, 1, 1], [], []>} : vector<8x8xbf16>, vector<8x32xbf16>, vector<8x32xf32> -> vector<8x32xf32>
      %129 = arith.addf %123, %128 : vector<8x32xf32>
      %c0_60 = arith.constant 0 : index
      %c0_61 = arith.constant 0 : index
      %130 = vector.load %arg15[%c0_60, %c0_61] : memref<8x32xf32, #tpu.memory_space<vmem>>, vector<8x32xf32>
      tpu.vector_store %arg15[%c0_60, %c0_61], %129 {strides = array<i32>} : memref<8x32xf32, #tpu.memory_space<vmem>>, vector<8x32xf32>,
    }
    %c4_i32_15 = arith.constant 4 : i32
    %c0_16 = arith.constant 0 : index
    %c0_17 = arith.constant 0 : index
    %36 = vector.load %arg15[%c0_16, %c0_17] : memref<8x32xf32, #tpu.memory_space<vmem>>, vector<8x32xf32>
    %37 = arith.addf %1, %36 : vector<8x32xf32>
    %c0_18 = arith.constant 0 : index
    %c0_19 = arith.constant 0 : index
    %38 = vector.load %arg7[%c0_18, %c0_19] : memref<1x32xf32, #tpu.memory_space<vmem>>, vector<1x32xf32>
    %39 = vector.broadcast %38 : vector<1x32xf32> to vector<8x32xf32>
    %40 = arith.addf %37, %39 : vector<8x32xf32>
    %c0_20 = arith.constant 0 : index
    %c0_21 = arith.constant 0 : index
    %41 = vector.load %arg8[%c0_20, %c0_21] : memref<1x32xf32, #tpu.memory_space<vmem>>, vector<1x32xf32>
    %c0_22 = arith.constant 0 : index
    %c0_23 = arith.constant 0 : index
    %42 = vector.load %arg9[%c0_22, %c0_23] : memref<1x32xf32, #tpu.memory_space<vmem>>, vector<1x32xf32>
    %cst_24 = arith.constant dense<0.000000e+00> : vector<8xf32>
    %43 = vector.multi_reduction <add>, %40, %cst_24 [1] : vector<8x32xf32> to vector<8xf32>
    %44 = vector.shape_cast %43 : vector<8xf32> to vector<8x1xf32>
    %cst_25 = arith.constant 3.200000e+01 : f32
    %45 = vector.broadcast %cst_25 : f32 to vector<8x1xf32>
    %46 = arith.divf %44, %45 : vector<8x1xf32>
    %47 = vector.broadcast %46 : vector<8x1xf32> to vector<8x32xf32>
    %48 = arith.subf %40, %47 : vector<8x32xf32>
    %49 = arith.mulf %48, %48 : vector<8x32xf32>
    %cst_26 = arith.constant dense<0.000000e+00> : vector<8xf32>
    %50 = vector.multi_reduction <add>, %49, %cst_26 [1] : vector<8x32xf32> to vector<8xf32>
    %51 = vector.shape_cast %50 : vector<8xf32> to vector<8x1xf32>
    %cst_27 = arith.constant 3.200000e+01 : f32
    %52 = vector.broadcast %cst_27 : f32 to vector<8x1xf32>
    %53 = arith.divf %51, %52 : vector<8x1xf32>
    %54 = vector.broadcast %46 : vector<8x1xf32> to vector<8x32xf32>
    %55 = arith.subf %40, %54 : vector<8x32xf32>
    %cst_28 = arith.constant 9.99999974E-6 : f32
    %56 = vector.broadcast %cst_28 : f32 to vector<8x1xf32>
    %57 = arith.addf %53, %56 : vector<8x1xf32>
    %58 = math.rsqrt %57 : vector<8x1xf32>
    %59 = vector.broadcast %58 : vector<8x1xf32> to vector<8x32xf32>
    %60 = arith.mulf %55, %59 : vector<8x32xf32>
    %61 = vector.broadcast %41 : vector<1x32xf32> to vector<8x32xf32>
    %62 = arith.mulf %60, %61 : vector<8x32xf32>
    %63 = vector.broadcast %42 : vector<1x32xf32> to vector<8x32xf32>
    %64 = arith.addf %62, %63 : vector<8x32xf32>
    %65 = arith.truncf %64 : vector<8x32xf32> to vector<8x32xbf16>
    %c0_29 = arith.constant 0 : index
    %c0_30 = arith.constant 0 : index
    %66 = vector.load %arg10[%c0_29, %c0_30] : memref<32x128xbf16, #tpu.memory_space<vmem>>, vector<32x128xbf16>
    %cst_31 = arith.constant dense<0.000000e+00> : vector<8x128xf32>
    %67 = tpu.matmul %65, %66, %cst_31 {dimension_numbers = #tpu.dot_dimension_numbers<[1], [0], [0], [1], [0, 0, 1, 1], [], []>} : vector<8x32xbf16>, vector<32x128xbf16>, vector<8x128xf32> -> vector<8x128xf32>
    %c0_32 = arith.constant 0 : index
    %c0_33 = arith.constant 0 : index
    %68 = vector.load %arg11[%c0_32, %c0_33] : memref<1x128xf32, #tpu.memory_space<vmem>>, vector<1x128xf32>
    %69 = vector.broadcast %68 : vector<1x128xf32> to vector<8x128xf32>
    %70 = arith.addf %67, %69 : vector<8x128xf32>
    %71 = arith.truncf %70 : vector<8x128xf32> to vector<8x128xbf16>
    %cst_34 = arith.constant 5.000000e-01 : bf16
    %72 = vector.broadcast %cst_34 : bf16 to vector<8x128xbf16>
    %73 = arith.mulf %72, %71 : vector<8x128xbf16>
    %cst_35 = arith.constant 4.467770e-02 : bf16
    %74 = vector.broadcast %cst_35 : bf16 to vector<8x128xbf16>
    %75 = arith.mulf %74, %71 : vector<8x128xbf16>
    %76 = arith.mulf %75, %71 : vector<8x128xbf16>
    %77 = arith.mulf %76, %71 : vector<8x128xbf16>
    %78 = arith.addf %71, %77 : vector<8x128xbf16>
    %cst_36 = arith.constant 7.968750e-01 : bf16
    %79 = vector.broadcast %cst_36 : bf16 to vector<8x128xbf16>
    %80 = arith.mulf %79, %78 : vector<8x128xbf16>
    %81 = math.tanh %80 : vector<8x128xbf16>
    %cst_37 = arith.constant 1.000000e+00 : bf16
    %82 = vector.broadcast %cst_37 : bf16 to vector<8x128xbf16>
    %83 = arith.addf %82, %81 : vector<8x128xbf16>
    %84 = arith.mulf %73, %83 : vector<8x128xbf16>
    %c0_38 = arith.constant 0 : index
    %c0_39 = arith.constant 0 : index
    %85 = vector.load %arg12[%c0_38, %c0_39] : memref<128x32xbf16, #tpu.memory_space<vmem>>, vector<128x32xbf16>
    %cst_40 = arith.constant dense<0.000000e+00> : vector<8x32xf32>
    %86 = tpu.matmul %84, %85, %cst_40 {dimension_numbers = #tpu.dot_dimension_numbers<[1], [0], [0], [1], [0, 0, 1, 1], [], []>} : vector<8x128xbf16>, vector<128x32xbf16>, vector<8x32xf32> -> vector<8x32xf32>
    %c0_41 = arith.constant 0 : index
    %c0_42 = arith.constant 0 : index
    %87 = vector.load %arg13[%c0_41, %c0_42] : memref<1x32xf32, #tpu.memory_space<vmem>>, vector<1x32xf32>
    %88 = vector.broadcast %87 : vector<1x32xf32> to vector<8x32xf32>
    %89 = arith.addf %86, %88 : vector<8x32xf32>
    %90 = arith.addf %40, %89 : vector<8x32xf32>
    %c0_43 = arith.constant 0 : index
    %c0_44 = arith.constant 0 : index
    %c0_45 = arith.constant 0 : index
    %91 = vector.load %arg14[%c0_43, %c0_44, %c0_45] : memref<1x8x32xf32, #tpu.memory_space<vmem>>, vector<1x8x32xf32>
    %92 = vector.shape_cast %91 : vector<1x8x32xf32> to vector<8x32xf32>
    %93 = vector.shape_cast %90 : vector<8x32xf32> to vector<1x8x32xf32>
    tpu.vector_store %arg14[%c0_43, %c0_44, %c0_45], %93 {strides = array<i32>} : memref<1x8x32xf32, #tpu.memory_space<vmem>>, vector<1x8x32xf32>,
    return
  }
  func.func @transform_0(%arg0: i32) -> (i32, i32, i32) {
    %c0_i32 = arith.constant 0 : i32
    %c0_i32_0 = arith.constant 0 : i32
    %c0_i32_1 = arith.constant 0 : i32
    return %arg0, %c0_i32, %c0_i32_0 : i32, i32, i32
  }
  func.func @transform_1(%arg0: i32) -> (i32, i32) {
    %c0_i32 = arith.constant 0 : i32
    %c0_i32_0 = arith.constant 0 : i32
    %c0_i32_1 = arith.constant 0 : i32
    return %c0_i32, %c0_i32_0 : i32, i32
  }
  func.func @transform_2(%arg0: i32) -> (i32, i32) {
    %c0_i32 = arith.constant 0 : i32
    %c0_i32_0 = arith.constant 0 : i32
    %c0_i32_1 = arith.constant 0 : i32
    return %c0_i32, %c0_i32_0 : i32, i32
  }
  func.func @transform_3(%arg0: i32) -> (i32, i32, i32) {
    %c0_i32 = arith.constant 0 : i32
    %c0_i32_0 = arith.constant 0 : i32
    %c0_i32_1 = arith.constant 0 : i32
    %c0_i32_2 = arith.constant 0 : i32
    return %c0_i32, %c0_i32_0, %c0_i32_1 : i32, i32, i32
  }
  func.func @transform_4(%arg0: i32) -> (i32, i32, i32) {
    %c0_i32 = arith.constant 0 : i32
    %c0_i32_0 = arith.constant 0 : i32
    %c0_i32_1 = arith.constant 0 : i32
    %c0_i32_2 = arith.constant 0 : i32
    return %c0_i32, %c0_i32_0, %c0_i32_1 : i32, i32, i32
  }
  func.func @transform_5(%arg0: i32) -> (i32, i32, i32) {
    %c0_i32 = arith.constant 0 : i32
    %c0_i32_0 = arith.constant 0 : i32
    %c0_i32_1 = arith.constant 0 : i32
    %c0_i32_2 = arith.constant 0 : i32
    return %c0_i32, %c0_i32_0, %c0_i32_1 : i32, i32, i32
  }
  func.func @transform_6(%arg0: i32) -> (i32, i32) {
    %c0_i32 = arith.constant 0 : i32
    %c0_i32_0 = arith.constant 0 : i32
    %c0_i32_1 = arith.constant 0 : i32
    return %c0_i32, %c0_i32_0 : i32, i32
  }
  func.func @transform_7(%arg0: i32) -> (i32, i32) {
    %c0_i32 = arith.constant 0 : i32
    %c0_i32_0 = arith.constant 0 : i32
    %c0_i32_1 = arith.constant 0 : i32
    return %c0_i32, %c0_i32_0 : i32, i32
  }
  func.func @transform_8(%arg0: i32) -> (i32, i32) {
    %c0_i32 = arith.constant 0 : i32
    %c0_i32_0 = arith.constant 0 : i32
    %c0_i32_1 = arith.constant 0 : i32
    return %c0_i32, %c0_i32_0 : i32, i32
  }
  func.func @transform_9(%arg0: i32) -> (i32, i32) {
    %c0_i32 = arith.constant 0 : i32
    %c0_i32_0 = arith.constant 0 : i32
    %c0_i32_1 = arith.constant 0 : i32
    return %c0_i32, %c0_i32_0 : i32, i32
  }
  func.func @transform_10(%arg0: i32) -> (i32, i32) {
    %c0_i32 = arith.constant 0 : i32
    %c0_i32_0 = arith.constant 0 : i32
    %c0_i32_1 = arith.constant 0 : i32
    return %c0_i32, %c0_i32_0 : i32, i32
  }
  func.func @transform_11(%arg0: i32) -> (i32, i32) {
    %c0_i32 = arith.constant 0 : i32
    %c0_i32_0 = arith.constant 0 : i32
    %c0_i32_1 = arith.constant 0 : i32
    return %c0_i32, %c0_i32_0 : i32, i32
  }
  func.func @transform_12(%arg0: i32) -> (i32, i32) {
    %c0_i32 = arith.constant 0 : i32
    %c0_i32_0 = arith.constant 0 : i32
    %c0_i32_1 = arith.constant 0 : i32
    return %c0_i32, %c0_i32_0 : i32, i32
  }
  func.func @transform_13(%arg0: i32) -> (i32, i32, i32) {
    %c0_i32 = arith.constant 0 : i32
    %c0_i32_0 = arith.constant 0 : i32
    %c0_i32_1 = arith.constant 0 : i32
    return %arg0, %c0_i32, %c0_i32_0 : i32, i32, i32
  }
}

</mosaic_0001>

<bundles_post_ra>
// kernel: transformer_block_fused.1
= control target key start
LH: loop header
LB: loop body
LE: loop exit
PB: predicated region body
PF: predicated region fallthrough
CT: control target
= control target key end

     0   :  { %s1392_s0 = inlined_call_operand.vmem [shape: f32[2,8,32], index: 0, kind: input, shape index: {}]   ;;  %s1393_s1 = inlined_call_operand.vmem [shape: f32[1,32], index: 1, kind: input, shape index: {}]   ;;  %s1394_s2 = inlined_call_operand.vmem [shape: f32[1,32], index: 2, kind: input, shape index: {}]   ;;  %s1395_s3 = inlined_call_operand.vmem [shape: bf16[4,32,24], index: 3, kind: input, shape index: {}]   ;;  %s1396_s4 = inlined_call_operand.vmem [shape: f32[4,1,24], index: 4, kind: input, shape index: {}]   ;;  %s1397_s5 = inlined_call_operand.vmem [shape: bf16[4,8,32], index: 5, kind: input, shape index: {}]   ;;  %s1398_s6 = inlined_call_operand.vmem [shape: f32[1,32], index: 6, kind: input, shape index: {}]   ;;  %s1399_s7 = inlined_call_operand.vmem [shape: f32[1,32], index: 7, kind: input, shape index: {}]   ;;  %s1400_s8 = inlined_call_operand.vmem [shape: f32[1,32], index: 8, kind: input, shape index: {}]   ;;  %s1401_s9 = inlined_call_operand.vmem [shape: bf16[32,128], index: 9, kind: input, shape index: {}]   ;;  %s1402_s10 = inlined_call_operand.vmem [shape: f32[1,128], index: 10, kind: input, shape index: {}]   ;;  %s1403_s11 = inlined_call_operand.vmem [shape: bf16[128,32], index: 11, kind: input, shape index: {}]   ;;  %s1404_s12 = inlined_call_operand.vmem [shape: f32[1,32], index: 12, kind: input, shape index: {}]   ;;  %s1405_s13 = inlined_call_operand.hbm [shape: f32[2,8,32], index: 13, kind: output, shape index: {}]  }
   0x1   :  { %1407 = sst [smem:[#allocation6_spill]] %s1392_s0 }
   0x2   :  { %1408 = sst [smem:[#allocation7_spill]] %s1393_s1 }
   0x3   :  { %1409 = sst [smem:[#allocation8_spill]] %s1394_s2 }
   0x4   :  { %1410 = sst [smem:[#allocation9_spill]] %s1395_s3 }
   0x5   :  { %18 = vsyncpa [#allocation4], 0 }
   0x6   :  { %20 = vsyncpa [#allocation4 + $0x1], 0  ;;  %s1184_s25 = smov 0   ;;  %s1186_s26 = smov 0  }
   0x7   :  { %s1188_s27 = smov 0   ;;  %s1190_s28 = smov 0  }
   0x8 LB: > { %s1205_s29 = sadd.s32 4294967295, %s1104_s28   ;;  %s888_s30 = sadd.s32 4294967294, %s1104_s28   ;;  %s1104_s28 = sphi %s1190_s28, %s1423_s28   ;;  %s1100_s27 = sphi %s1188_s27, %s1422_s27   ;;  %s1096_s26 = sphi %s1186_s26, %s1421_s26   ;;  %s1092_s25 = sphi %s1184_s25, %s1420_s25  }
   0x9   : > { %s1209_s14 = sadd.s32 1, %s1104_s28   ;;  %s311_s15 = sadd.s32 1, %s1100_s27 }
   0xa   : > { %s308_s16 = ssub.s32 %s1104_s28, %s1209_s14  ;;  %p321_p0 = scmp.ne.s32.totalorder %s1100_s27, %s1096_s26 }
   0xb   : > { %p309_p1 = scmp.eq.s32.totalorder %s308_s16, 0  ;;  %p322_p2 = scmp.eq.s32.totalorder %s1205_s29, 1 }
   0xc   : > { %p327_p3 = scmp.ne.s32.totalorder %s1096_s26, %s1092_s25  ;;  %p328_p4 = scmp.eq.s32.totalorder %s888_s30, 1 }
   0xd   : > { %s1220_s17 = scalar_select %p309_p1, %s1100_s27, %s311_s15  }
   0xe   : > { %p1222_p5 = por %p322_p2, %p321_p0  ;;  %p1226_p6 = por %p328_p4, %p327_p3 }
   0xf   : > { %p891_p7 = scmp.ge.s32.totalorder %s1104_s28, 1  ;;  %p389_p8 = scmp.lt.s32.totalorder %s1104_s28, 3 }
  0x11   : > { %p390_p9 = pnand %p891_p7, %p389_p8 }
  0x12   : > { %p432_p10 = scmp.lt.s32.totalorder (!%p390_p9), %s1205_s29, 1  ;;  %s1413_s0 = sld [smem:[#allocation6_spill]] (!%p390_p9) }
  0x13   : > { %393 = sbr.rel (%p390_p9) target bundleno = 1835 (0x72b), region = 72  ;;  %s1406_s30 = sand.u32 (!%p390_p9), 1, %s1096_s26  }
  0x14   : > { %s1252_s15 = sshll.u32 (!%p390_p9), %s1406_s30, 3  ;;  %s1414_s1 = sld [smem:[#allocation7_spill]] (!%p390_p9) }
  0x15   : > { %s1415_s2 = sld [smem:[#allocation8_spill]] (!%p390_p9) }
  0x18   : > { %vm440_vm0 = vcmask 261120   ;;  %v479_v0 = vlaneseq  ;;  %v1110_v1 = vmov 0.0   ;;  %s433_s20 = scalar_select %p432_p10, %s1205_s29, 1  ;;  %v1111_v7 = vmov 32.0  }
  0x19   : > { %485 = vst.msk [vmem:[#allocation2] sm:$0xff] %vm440_vm0, %v1110_v1  ;;  %1020 = vrcp.f32 %v1111_v7 }
  0x1a   : > { %v480_v2 = vshrl.u32 %v479_v0, 7  ;;  %v482_v3 = vand.u32 127, %v479_v0  ;;  %s893_s21 = sshll.u32 %s433_s20, 3  ;;  %v1018_v28 = vld [vmem:[%s1414_s1] ss:$0 sm:$0xff] }
  0x1b   : > { %s435_s24 = scalar_lea.vmem %s1413_s0, %s893_s21  ;;  %v1019_v30 = vld [vmem:[%s1415_s2] ss:$0 sm:$0xff] }
  0x1c   : > { %vm483_vm1 = vcmp.gt.s32.totalorder %v482_v3, %v480_v2  ;;  %v1240_v5 = vld [vmem:[%s435_s24] sm:$0xff]  ;;  %s1266_s24 = smov 0  }
  0x1d   : > { %v1238_v4 = vsel %vm483_vm1, -1e+30, %v1110_v1  ;;  %v441_v6 = vsel %vm440_vm0, %v1240_v5, 0.0 }
  0x1e   : > { %442 = vadd.xlane.f32.xlu0 %v441_v6 }
  0x1f   : > { %v1021_v8 = vpop.eup %1020 }
  0x20   : > { %v445_v9 = vmul.f32 32.0, %v1021_v8  ;;  %vm449_vm2 = vweird.f32 %v1021_v8 }
  0x22   : > { %v446_v10 = vsub.f32 1.0, %v445_v9 }
  0x24   : > { %v447_v11 = vmul.f32 %v1021_v8, %v446_v10 }
  0x26   : > { %v448_v12 = vadd.f32 %v1021_v8, %v447_v11 }
  0x28   : > { %v1244_v13 = vsel %vm449_vm2, %v1021_v8, %v448_v12 }
  0x91   : > { %v443_v14 = vpop.xlane.xlu0 %442 }
  0x92   : > { %v451_v15 = vmul.f32 %v1244_v13, %v443_v14 }
  0x94   : > { %v452_v16 = vsub.f32 %v1240_v5, %v451_v15 }
  0x96   : > { %v453_v17 = vmul.f32 %v452_v16, %v452_v16 }
  0x98   : > { %v454_v18 = vsel %vm440_vm0, %v453_v17, 0.0 }
  0x99   : > { %455 = vadd.xlane.f32.xlu0 %v454_v18 }
 0x10c   : > { %v456_v19 = vpop.xlane.xlu0 %455 }
 0x10d   : > { %v457_v20 = vmul.f32 %v456_v19, %v1244_v13 }
 0x10f   : > { %v458_v21 = vadd.f32 1e-05, %v457_v20 }
 0x111   : > { %1022 = vrsqrt.f32 %v458_v21  ;;  %vm465_vm4 = vweird.f32 %v458_v21 }
 0x117   : > { %v1023_v22 = vpop.eup %1022 }
 0x118   : > { %v460_v23 = vmul.f32 %v1023_v22, %v458_v21  ;;  %vm466_vm3 = vweird.f32 %v1023_v22 }
 0x119   : > { %vm467_vm5 = vmor %vm465_vm4, %vm466_vm3 }
 0x11a   : > { %v461_v24 = vmul.f32 %v1023_v22, %v460_v23 }
 0x11c   : > { %v462_v25 = vmul.f32 0.5, %v461_v24 }
 0x11e   : > { %v463_v26 = vsub.f32 1.5, %v462_v25 }
 0x120   : > { %v464_v27 = vmul.f32 %v1023_v22, %v463_v26 }
 0x122   : > { %v468_v29 = vsel %vm467_vm5, %v1023_v22, %v464_v27 }
 0x123   : > { %v469_v31 = vmul.f32 %v468_v29, %v452_v16 }
 0x125   : > { %v473_v32 = vmul.f32 %v1018_v28, %v469_v31 }
 0x127   : > { %v1261_v33 = vadd.f32 %v1019_v30, %v473_v32 }
 0x129   : > { %v478_v34 = vpack.c.bf16 %v1261_v33, %v1261_v33 }
 0x12a LB: >> { %s954_s16 = sshll.u32 %s1108_s24, 4  ;;  %s499_s22 = scalar_lea.vmem %s1396_s4, %s1108_s24  ;;  %vm536_vm6 = vcmask 64512   ;;  %vm573_vm7 = vcmask 1043456   ;;  %v590_v0 = vld [vmem:[#allocation2] sm:$0xff]  ;;  %s1108_s24 = sphi %s1266_s24, %s491_s24  }
 0x12b   : >> { %s1416_s3 = sld [smem:[#allocation9_spill]]  ;;  %v1024_v37 = vld [vmem:[%s499_s22] ss:$0 sm:$0xff]  ;;  %s1112_s23 = smov 120  }
 0x12c   : >> { %s1113_s0 = smov 112  }
 0x131   : >> { %s494_s1 = scalar_lea.vmem %s1416_s3, %s954_s16 }
 0x132   : >> { %v956_v35 = vld [vmem:[%s494_s1 + $0x8] sm:$0xff]  ;;  %v955_v36 = vld [vmem:[%s494_s1] sm:$0xff]  ;;  %s907_s1 = sshll.u32 %s1108_s24, 2  ;;  %s491_s24 = sadd.s32 1, %s1108_s24  }
 0x133   : >> { %525 = vmatpush.bf16.msra.mxu0 %v956_v35  ;;  %s593_s16 = scalar_lea.vmem %s1397_s5, %s907_s1  ;;  %p488_p11 = scmp.ge.s32.totalorder %s491_s24, 4  }
 0x134   : >> { %v594_v59 = vld [vmem:[%s593_s16] sm:$0xf]  ;;  %v958_v16 = vld [vmem:[%s1401_s9 + $0x8] sm:$0xff] (%p488_p11)  ;;  %v966_v32 = vld [vmem:[%s1403_s11 + $0x38] sm:$0xff] (%p488_p11)  ;;  %s951_s16 = sshll.u32 (%p488_p11), %s1205_s29, 3  ;;  %s1417_s1 = scalar_lea.vmem (%p488_p11), [#allocation3], %s1252_s15 }
 0x135   : >> { %v599_v60 = vsel %vm573_vm7, %v594_v59, 0  ;;  %v1029_v7 = vld [vmem:[%s1398_s6] ss:$0 sm:$0xff] (%p488_p11)  ;;  %v965_v33 = vld [vmem:[%s1403_s11 + $0x30] sm:$0xff] (%p488_p11)  ;;  %s816_s30 = sshll.u32 (%p488_p11), %s1417_s1, 4  ;;  %s1418_s29 = smov (%p488_p11), %s1417_s1  ;;  %s817_s30 = int_to_ptr.vmem [resolvable:$true] %s816_s30 }
 0x136   : >> { %608 = vmatpush.bf16.msra.mxu3 %v599_v60  ;;  %v1030_v26 = vld [vmem:[%s1399_s7] ss:$0 sm:$0xff] (%p488_p11)  ;;  %s1058_s22 = scalar_lea.hbm (%p488_p11), %s1405_s13, 16 }
 0x137   : >> { %526 = vmatpush.bf16.msra.mxu0 %v955_v36  ;;  %v963_v35 = vld [vmem:[%s1403_s11 + $0x20] sm:$0xff] (%p488_p11) }
 0x138   : > { %v1032_v36 = vld [vmem:[%s1402_s10] ss:$0 sm:$0xff] (%p488_p11) }
 0x13a   : >> { %904 = vmatmul.msk.bf16.vlgmr.msra.gmra.mxu0 %vm440_vm0, %v478_v34  ;;  %v964_v34 = vld [vmem:[%s1403_s11 + $0x28] sm:$0xff] (%p488_p11) }
 0x13b   : > { %685 = vmatpush.bf16.msra.mxu0 (%p488_p11), %v958_v16 }
 0x1b7   : >> { %v528_v38 = vpop.f32.mrf.mxu0 }
 0x1b8   : >> { %v529_v39 = vadd.f32 %v1024_v37, %v528_v38  ;;  %v962_v37 = vld [vmem:[%s1403_s11 + $0x18] sm:$0xff] (%p488_p11) }
 0x1ba   : >> { %v532_v40 = vpack.c.bf16 %v529_v39, %v529_v39 }
 0x1bc   : >> { %534 = vrot.lane.b32.xlu0 %v532_v40, %s1112_s23  ;;  %s1419_s23 = sand.u32 (%p488_p11), 1, %s1096_s26  }
 0x1bd   : > { %s804_s20 = scalar_lea.sflag (%p488_p11), [#allocation4], %s1419_s23 }
 0x1bf   : >> { %v530_v41 = vpop.f32.mrf.mxu0 }
 0x1c0   : > { %v961_v41 = vld [vmem:[%s1403_s11 + $0x10] sm:$0xff] (%p488_p11) }
 0x22e   : >> { %v535_v42 = vpop.permute.xlu0 %534 }
 0x22f   : >> { %v541_v43 = vsel %vm536_vm6, %v535_v42, 0 }
 0x230   : >> { %550 = vmatpush.bf16.xpose.msra.mxu1 %v541_v43 }
 0x237   : >> { %905 = vmatmul.msk.bf16.vlgmr.msra.gmra.mxu1 %vm536_vm6, %v532_v40 }
 0x238   : > { %788 = vmatpush.bf16.msra.mxu1 (%p488_p11), %v966_v32 }
 0x23c   : > { %789 = vmatpush.bf16.msra.mxu1 (%p488_p11), %v965_v33 }
 0x240   : > { %790 = vmatpush.bf16.msra.mxu1 (%p488_p11), %v964_v34 }
 0x244   : > { %791 = vmatpush.bf16.msra.mxu1 (%p488_p11), %v963_v35 }
 0x248   : > { %792 = vmatpush.bf16.msra.mxu1 (%p488_p11), %v962_v37 }
 0x24c   : > { %793 = vmatpush.bf16.msra.mxu1 (%p488_p11), %v961_v41 }
 0x2b4   : >> { %v552_v44 = vpop.f32.mrf.mxu1 }
 0x2b5   : >> { %v553_v45 = vadd.f32 %v552_v44, %v1238_v4  ;;  %v960_v44 = vld [vmem:[%s1403_s11 + $0x8] sm:$0xff] (%p488_p11) }
 0x2b6   : > { %794 = vmatpush.bf16.msra.mxu1 (%p488_p11), %v960_v44 }
 0x2b7   : >> { %v556_v46 = vsel %vm536_vm6, %v553_v45, -inf }
 0x2b8   : >> { %557 = vmax.xlane.f32.xlu0 %v556_v46 }
 0x2bc   : >> { %v554_v47 = vpop.f32.mrf.mxu1 }
 0x32b   : >> { %v558_v48 = vpop.xlane.xlu0 %557 }
 0x32c   : >> { %v559_v49 = vsub.f32 %v553_v45, %v558_v48  ;;  %v959_v48 = vld [vmem:[%s1403_s11] sm:$0xff] (%p488_p11) }
 0x32d   : > { %795 = vmatpush.bf16.msra.mxu1 (%p488_p11), %v959_v48 }
 0x32e   : >> { %v560_v50 = vmul.f32 1.442695, %v559_v49 }
 0x330   : >> { %1025 = vpow2.f32 %v560_v50 }
 0x336   : >> { %v1026_v51 = vpop.eup %1025 }
 0x337   : >> { %v562_v52 = vsel %vm536_vm6, %v1026_v51, 0.0 }
 0x338   : >> { %563 = vadd.xlane.f32.xlu1 %v562_v52 }
 0x351   : >> { %568 = vrot.lane.b32.xlu1 %v532_v40, %s1113_s0  ;;  %s814_s0 = scalar_lea.hbm (%p488_p11), %s1405_s13, %s951_s16 }
 0x352   : > { %s818_s2 = sshll.u32 (%p488_p11), %s814_s0, 4  ;;  %s819_s2 = int_to_ptr.hbm [resolvable:$true] %s818_s2 }
 0x353   : > { %s1052_s21 = sshra.s32 (%p488_p11), %s819_s2, 4  ;;  %s1053_s21 = int_to_ptr.hbm [resolvable:$true] %s1052_s21 }
 0x354   : > { %s1054_s3 = scalar_lea.hbm (%p488_p11), %s1053_s21, 8  ;;  %p1059_p1 = scmp.lt.s32.totalorder (%p488_p11), %s1053_s21, %s1405_s13 }
 0x355   : > { %p1055_p12 = scmp.ne.s32.totalorder (%p488_p11), %s1053_s21, %s1054_s3  ;;  %p1060_p2 = scmp.lt.s32.totalorder (%p488_p11), %s1058_s22, %s1054_s3 }
 0x357   : > { %p1056_p13 = pnand (%p488_p11), %p1055_p12, %p1222_p5  ;;  %p1061_p3 = por (%p488_p11), %p1060_p2, %p1059_p1 }
 0x359   : > { %p1057_p0 = pneg (%p488_p11), %p1056_p13 }
 0x35b   : > { %p1062_p4 = pnand (%p488_p11), %p1061_p3, %p1057_p0 }
 0x3ab   : >> { %v564_v53 = vpop.xlane.xlu1 %563 }
 0x3ac   : >> { %1027 = vrcp.f32 %v564_v53 }
 0x3b2   : >> { %v1028_v54 = vpop.eup %1027 }
 0x3b3   : >> { %v566_v55 = vmul.f32 %v1028_v54, %v1026_v51 }
 0x3b5   : >> { %v567_v58 = vpack.c.bf16 %v566_v55, %v566_v55 }
 0x3c3   : >> { %v569_v56 = vpop.permute.xlu1 %568 }
 0x3c4   : >> { %v575_v57 = vsel %vm573_vm7, %v569_v56, 0 }
 0x3c5   : >> { %584 = vmatpush.bf16.msra.mxu2 %v575_v57 }
 0x3c8   : >> { %906 = vmatmul.msk.bf16.vlgmr.msra.gmra.mxu2 %vm536_vm6, %v567_v58 }
 0x44b   : >> { %v586_v61 = vpop.f32.mrf.mxu2 }
 0x44c   : >> { %v591_v62 = vpack.c.bf16 %v586_v61, %v586_v61 }
 0x44e   : >> { %908 = vmatmul.msk.bf16.vlgmr.msra.gmra.mxu3 %vm536_vm6, %v591_v62 }
 0x453   : >> { %v588_v63 = vpop.f32.mrf.mxu2 }
 0x4d1   : >> { %v610_v1 = vpop.f32.mrf.mxu3 }
 0x4d2   : >> { %v614_v2 = vadd.f32 %v610_v1, %v590_v0 }
 0x4d4   : >> { %615 = vst.msk [vmem:[#allocation2] sm:$0xff] %vm440_vm0, %v614_v2 }
 0x4d9   : >> { %v612_v3 = vpop.f32.mrf.mxu3  ;;  %490 = sbr.rel (!%p488_p11) target bundleno = 298 (0x12a), region = 117 }
 0x4db   : > { %v616_v6 = vld [vmem:[#allocation2] sm:$0xff] (%p488_p11) }
 0x4dc   : > { %v617_v8 = vadd.f32 (%p488_p11), %v616_v6, %v1240_v5  ;;  %v957_v5 = vld [vmem:[%s1401_s9] sm:$0xff] (%p488_p11) }
 0x4dd   : > { %686 = vmatpush.bf16.msra.mxu0 (%p488_p11), %v957_v5 }
 0x4de   : > { %v1302_v9 = vadd.f32 %v1029_v7, %v617_v8 }
 0x4e0   : > { %v625_v10 = vsel %vm440_vm0, %v1302_v9, 0.0 }
 0x4e1   : > { %626 = vadd.xlane.f32.xlu0 %v625_v10 }
 0x554   : > { %v627_v11 = vpop.xlane.xlu0 %626 }
 0x555   : > { %v628_v12 = vmul.f32 %v627_v11, %v1244_v13  ;;  %v1033_v11 = vld [vmem:[%s1404_s12] ss:$0 sm:$0xff] }
 0x557   : > { %v629_v14 = vsub.f32 %v1302_v9, %v628_v12 }
 0x559   : > { %v630_v15 = vmul.f32 %v629_v14, %v629_v14 }
 0x55b   : > { %v631_v4 = vsel %vm440_vm0, %v630_v15, 0.0 }
 0x55c   : > { %632 = vadd.xlane.f32.xlu0 %v631_v4 }
 0x5cf   : > { %v633_v17 = vpop.xlane.xlu0 %632 }
 0x5d0   : > { %v634_v18 = vmul.f32 %v633_v17, %v1244_v13  ;;  %v1031_v13 = vld [vmem:[%s1400_s8] ss:$0 sm:$0xff] }
 0x5d2   : > { %v635_v19 = vadd.f32 1e-05, %v634_v18 }
 0x5d4   : > { %1034 = vrsqrt.f32 %v635_v19  ;;  %vm642_vm9 = vweird.f32 %v635_v19 }
 0x5da   : > { %v1035_v20 = vpop.eup %1034 }
 0x5db   : > { %v637_v21 = vmul.f32 %v1035_v20, %v635_v19  ;;  %vm643_vm8 = vweird.f32 %v1035_v20 }
 0x5dc   : > { %vm644_vm10 = vmor %vm642_vm9, %vm643_vm8 }
 0x5dd   : > { %v638_v22 = vmul.f32 %v1035_v20, %v637_v21 }
 0x5df   : > { %v639_v23 = vmul.f32 0.5, %v638_v22 }
 0x5e1   : > { %v640_v24 = vsub.f32 1.5, %v639_v23 }
 0x5e3   : > { %v641_v25 = vmul.f32 %v1035_v20, %v640_v24 }
 0x5e5   : > { %v645_v27 = vsel %vm644_vm10, %v1035_v20, %v641_v25 }
 0x5e6   : > { %v646_v28 = vmul.f32 %v645_v27, %v629_v14 }
 0x5e8   : > { %v650_v29 = vmul.f32 %v1030_v26, %v646_v28 }
 0x5ea   : > { %v654_v30 = vadd.f32 %v1031_v13, %v650_v29 }
 0x5ec   : > { %v655_v31 = vpack.c.bf16 %v654_v30, %v654_v30 }
 0x5ee   : > { %917 = vmatmul.msk.bf16.vlgmr.msra.gmra.mxu0 %vm440_vm0, %v655_v31 }
 0x66b   : > { %v688_v38 = vpop.f32.mrf.mxu0 }
 0x66c   : > { %v689_v39 = vadd.f32 %v1032_v36, %v688_v38 }
 0x66e   : > { %v692_v40 = vpack.c.bf16 %v689_v39, %v689_v39 }
 0x670   : > { %v693_v42 = vunpack.c.l.bf16 %v692_v40 }
 0x672   : > { %v696_v43 = vmul.f32 0.044677734, %v693_v42  ;;  %v694_v62 = vmul.f32 0.5, %v693_v42 }
 0x673   : > { %v690_v45 = vpop.f32.mrf.mxu0 }
 0x674   : > { %v697_v46 = vpack.c.bf16 %v696_v43, %v696_v43  ;;  %v695_v1 = vpack.c.bf16 %v694_v62, %v694_v62 }
 0x676   : > { %v698_v47 = vunpack.c.l.bf16 %v697_v46  ;;  %v716_v6 = vunpack.c.l.bf16 %v695_v1 }
 0x678   : > { %v699_v49 = vmul.f32 %v698_v47, %v693_v42 }
 0x67a   : > { %v700_v50 = vpack.c.bf16 %v699_v49, %v699_v49 }
 0x67c   : > { %v701_v51 = vunpack.c.l.bf16 %v700_v50 }
 0x67e   : > { %v702_v52 = vmul.f32 %v701_v51, %v693_v42 }
 0x680   : > { %v703_v53 = vpack.c.bf16 %v702_v52, %v702_v52 }
 0x682   : > { %v704_v54 = vunpack.c.l.bf16 %v703_v53 }
 0x684   : > { %v705_v55 = vadd.f32 %v704_v54, %v693_v42 }
 0x686   : > { %v706_v56 = vpack.c.bf16 %v705_v55, %v705_v55 }
 0x688   : > { %v707_v57 = vunpack.c.l.bf16 %v706_v56 }
 0x68a   : > { %v708_v58 = vmul.f32 0.796875, %v707_v57 }
 0x68c   : > { %v709_v59 = vpack.c.bf16 %v708_v58, %v708_v58 }
 0x68e   : > { %v710_v60 = vunpack.c.l.bf16 %v709_v59 }
 0x690   : > { %1036 = vtanh.f32 %v710_v60 }
 0x696   : > { %v1037_v61 = vpop.eup %1036 }
 0x697   : > { %v712_v63 = vpack.c.bf16 %v1037_v61, %v1037_v61 }
 0x699   : > { %v713_v0 = vunpack.c.l.bf16 %v712_v63 }
 0x69b   : > { %v714_v2 = vadd.f32 1.0, %v713_v0 }
 0x69d   : > { %v715_v3 = vpack.c.bf16 %v714_v2, %v714_v2 }
 0x69f   : > { %v717_v7 = vunpack.c.l.bf16 %v715_v3 }
 0x6a1   : > { %v718_v8 = vmul.f32 %v717_v7, %v716_v6 }
 0x6a3   : > { %v719_v10 = vpack.c.bf16 %v718_v8, %v718_v8 }
 0x6a5   : > { %796 = vmatmul.bf16.vlgmr.msra.gmra.mxu1 %v719_v10 }
 0x722   : > { %v797_v12 = vpop.f32.mrf.mxu1 }
 0x723   : > { %v798_v14 = vadd.f32 %v1033_v11, %v797_v12 }
 0x725   : > { %v801_v15 = vadd.f32 %v798_v14, %v1302_v9 }
 0x727   : > { %802 = vst.msk [vmem:[%s1418_s29] sm:$0xff] %vm440_vm0, %v801_v15 }
 0x728   : > { %1065 = shalt.err (!%p1062_p4)
}
 0x729   : > { %967 = dma.vmem_to_hbm [thread:$0]  (%p1222_p5), %s817_s30, 128, %s819_s2, %s804_s20  }
 0x72a   : > { %v799_v9 = vpop.f32.mrf.mxu1 }
 0x72b PF: > { %p973_p7 = scmp.ge.s32.totalorder %s1104_s28, 2  ;;  %s830_s15 = sand.u32 1, %s1092_s25  }
 0x72c   : > { %s831_s29 = scalar_lea.sflag [#allocation4], %s830_s15 }
 0x72d   : > { %p970_p8 = pnand %p973_p7, %p1226_p6 }
 0x72f   : > { %p971_p9 = pneg %p970_p8 }
 0x731   : > { %1087 = dma.done.wait (%p971_p9), %s831_s29, 128  }
 0x732   : > { %1089 = vsyncadd (%p971_p9), %s831_s29, 4294967168  ;;  %p23_p10 = scmp.ge.s32.totalorder %s1209_s14, 4   ;;  %s1420_s25 = smov %s1096_s26 }
 0x733   : > { %s1421_s26 = smov %s1100_s27  ;;  %s1422_s27 = smov %s1220_s17 }
 0x734   : > { %s1423_s28 = smov %s1209_s14  ;;  %25 = sbr.rel (!%p23_p10) target bundleno = 8 (0x8), region = 128 }
 0x739   :  { %837 = vsyncpa [#allocation4], 1 }
 0x73a   :  { %839 = vsyncpa [#allocation4 + $0x1], 1 }

</bundles_post_ra>
